<compile_context>
chip_gen: v6e
topology: v6e:2x2x1
jax: 0.10.0
libtpu: 0.0.40
codegen_flags: <defaults>
</compile_context>

<pallas_src>
import jax
import jax.numpy as jnp
from jax import lax
from jax.experimental import pallas as pl
from jax.experimental.pallas import tpu as pltpu


# ----------------------------------------------------------------------------
# Pallas kernel 1: tiled fused matmul + bias (LSTM input projections)
#   bf16 operands on the MXU, f32 accumulation, f32 bias add / output.
# ----------------------------------------------------------------------------
def _matmul_bias_kernel(x_ref, w_ref, b_ref, o_ref):
    o_ref[...] = (
        jnp.dot(x_ref[...], w_ref[...], preferred_element_type=jnp.float32)
        + b_ref[...]
    )


def matmul_bias(x, w, b, *, tm=256, tn=512):
    """x: [M, K] f32, w: [K, N] f32, b: [N] f32 -> [M, N] f32."""
    M, K = x.shape
    _, N = w.shape
    tm = min(tm, M)
    tn = min(tn, N)
    grid = (pl.cdiv(M, tm), pl.cdiv(N, tn))
    return pl.pallas_call(
        _matmul_bias_kernel,
        out_shape=jax.ShapeDtypeStruct((M, N), jnp.float32),
        grid=grid,
        in_specs=[
            pl.BlockSpec((tm, K), lambda i, j: (i, 0)),   # x tile, streamed over M
            pl.BlockSpec((K, tn), lambda i, j: (0, j)),   # weight tile, resident over M
            pl.BlockSpec((1, tn), lambda i, j: (0, j)),   # bias row
        ],
        out_specs=pl.BlockSpec((tm, tn), lambda i, j: (i, j)),
        compiler_params=pltpu.CompilerParams(
            dimension_semantics=("parallel", "parallel"),
            vmem_limit_bytes=32 * 1024 * 1024,
        ),
    )(
        x.astype(jnp.bfloat16),
        w.astype(jnp.bfloat16),
        b.reshape(1, N).astype(jnp.float32),
    )


# ----------------------------------------------------------------------------
# Pallas kernel 2: attention over bi-LSTM outputs, TB sequences per grid step
#   u      = tanh(h @ W1^T + b1)                      [TB*T, D]  (bf16 MXU, f32 acc)
#   score  = sum_d u * w2_row                         [TB, T]    (VPU + lane reduce)
#   alpha  = length-masked softmax over T (+1e-9 denom, masked before max)
#   s      = alpha @ h                                [TB, D]    (MXU)
# ----------------------------------------------------------------------------
def _attention_kernel(h_ref, len_ref, w1_ref, b1_ref, w2_ref, o_ref):
    TB, T, D = h_ref.shape
    h = h_ref[...]                                     # [TB, T, D] f32
    h2 = h.reshape(TB * T, D)                          # (T,D)=(8,128): tile-aligned merge

    u = jnp.tanh(
        jnp.dot(h2.astype(jnp.bfloat16), w1_ref[...],
                preferred_element_type=jnp.float32)
        + b1_ref[...]
    )                                                  # [TB*T, D] f32
    u3 = u.reshape(TB, T, D)

    # scores on the VPU (w2 is a [1, D] row), lane reduction to [TB, T]
    scores = jnp.sum(u3 * w2_ref[...], axis=-1)        # [TB, T]

    # length-masked, numerically-stable softmax over T (+1e-9 denom for parity)
    pos = lax.broadcasted_iota(jnp.int32, (TB, T), 1)
    mask = pos < len_ref[...]                          # [TB, T] bool
    neg_big = jnp.float32(-1e30)
    ms = jnp.where(mask, scores, neg_big)
    m = jnp.max(ms, axis=-1, keepdims=True)            # [TB, 1]
    e = jnp.exp(ms - m) * mask.astype(jnp.float32)     # [TB, T]
    denom = jnp.sum(e, axis=-1, keepdims=True) + 1e-9  # [TB, 1]
    alpha = e * pl.reciprocal(denom, approx=True)      # [TB, T]

    # weighted sum on the MXU: (TB, 1, T) @ (TB, T, D) -> (TB, 1, D)
    s = jnp.einsum("bqt,btd->bqd", alpha[:, None, :], h,
                   preferred_element_type=jnp.float32)
    o_ref[...] = s[:, 0, :].astype(o_ref.dtype)


def attention_pallas(r_out, w1_t_bf16, b1, w2_row, sen_len, *, tb=8):
    """r_out: [B, T, D] f32; w1_t_bf16: [D, D] bf16; b1: [D]; w2_row: [1, D];
    sen_len: [B] int."""
    B, T, D = r_out.shape
    tb = min(tb, B)
    lens = sen_len.astype(jnp.int32).reshape(B, 1)
    return pl.pallas_call(
        _attention_kernel,
        out_shape=jax.ShapeDtypeStruct((B, D), jnp.float32),
        grid=(pl.cdiv(B, tb),),
        in_specs=[
            pl.BlockSpec((tb, T, D), lambda i: (i, 0, 0)),   # h: TB sequences / step
            pl.BlockSpec((tb, 1), lambda i: (i, 0)),         # lengths (VMEM int32)
            pl.BlockSpec((D, D), lambda i: (0, 0)),          # W1^T (bf16, resident)
            pl.BlockSpec((1, D), lambda i: (0, 0)),          # b1 row
            pl.BlockSpec((1, D), lambda i: (0, 0)),          # w2 row
        ],
        out_specs=pl.BlockSpec((tb, D), lambda i: (i, 0)),   # lane-dense output block
        compiler_params=pltpu.CompilerParams(
            dimension_semantics=("parallel",),               # megacore on v7x
            vmem_limit_bytes=32 * 1024 * 1024,
        ),
    )(r_out, lens, w1_t_bf16, b1.reshape(1, D).astype(jnp.float32), w2_row)


# ----------------------------------------------------------------------------
# Bi-directional LSTM (PyTorch nn.LSTM semantics: gate order i, f, g, o).
# Both directions' input projections are fused into one Pallas matmul; the
# recurrence runs once over time carrying both directions.
# Note: like the un-packed PyTorch nn.LSTM call in the reference, padded
# timesteps ARE processed by both directions.
# ----------------------------------------------------------------------------
def bilstm(x, params):
    B, T, I = x.shape
    H = params["w_hh_f"].shape[1]

    # Fused input projection: [B*T, I] @ [I, 8H] + [8H]
    w_ih_cat = jnp.concatenate([params["w_ih_f"].T, params["w_ih_b"].T], axis=1)
    b_cat = jnp.concatenate(
        [params["b_ih_f"] + params["b_hh_f"], params["b_ih_b"] + params["b_hh_b"]]
    )
    xp = matmul_bias(x.reshape(B * T, I), w_ih_cat, b_cat).reshape(B, T, 8 * H)
    xp_f = xp[:, :, : 4 * H]
    xp_b = xp[:, :, 4 * H:][:, ::-1, :]                 # backward dir: reversed in time
    xs = jnp.swapaxes(jnp.concatenate([xp_f, xp_b], axis=-1), 0, 1)  # [T, B, 8H]

    # Block-diagonal recurrent weight [2H, 8H]: one wide matmul per step.
    zeros = jnp.zeros((H, 4 * H), jnp.float32)
    w_hh_bd = jnp.concatenate(
        [
            jnp.concatenate([params["w_hh_f"].T, zeros], axis=1),
            jnp.concatenate([zeros, params["w_hh_b"].T], axis=1),
        ],
        axis=0,
    )

    # TODO(synk): LSTM recurrence is inherently sequential; no clean Pallas win.
    def step(carry, xs_t):
        h, c = carry                                    # [B, 2, H] each
        gates = xs_t + h.reshape(B, 2 * H) @ w_hh_bd    # [B, 8H]
        gates = gates.reshape(B, 2, 4, H)
        i = jax.nn.sigmoid(gates[:, :, 0])
        f = jax.nn.sigmoid(gates[:, :, 1])
        g = jnp.tanh(gates[:, :, 2])
        o = jax.nn.sigmoid(gates[:, :, 3])
        c = f * c + i * g
        h = o * jnp.tanh(c)
        return (h, c), h

    h0 = jnp.zeros((B, 2, H), jnp.float32)
    c0 = jnp.zeros((B, 2, H), jnp.float32)
    _, hs = lax.scan(step, (h0, c0), xs)                # [T, B, 2, H]
    h_f = jnp.swapaxes(hs[:, :, 0, :], 0, 1)            # [B, T, H]
    h_b = jnp.swapaxes(hs[::-1, :, 1, :], 0, 1)         # [B, T, H] back in time order
    return jnp.concatenate([h_f, h_b], axis=-1)         # [B, T, 2H]


# ----------------------------------------------------------------------------
# Full forward (mirrors attention.forward)
# ----------------------------------------------------------------------------
def attention_forward(params, inputs, sen_len):
    r_out = bilstm(inputs, params)                      # [B, T, 2H]
    _, _, D = r_out.shape
    s = attention_pallas(
        r_out,
        params["w1"].T.astype(jnp.bfloat16),            # [D, D] for h @ W1^T
        params["b1"],
        params["w2"],                                   # [1, D] row (no bias)
        sen_len,
    )                                                   # [B, D]
    # final reshape: [-1, 2 * 2 * n_hidden] -> pairs of consecutive batch rows
    return s.reshape(-1, 2 * D)


# ----------------------------------------------------------------------------
# Deterministic parameter init (PyTorch-default-style uniform bounds)
# ----------------------------------------------------------------------------
def init_params(key, input_size, hidden):
    sh2 = 2 * hidden
    keys = jax.random.split(key, 11)
    kl = 1.0 / jnp.sqrt(hidden)
    kf = 1.0 / jnp.sqrt(sh2)

    def u(kk, shape, bound):
        return jax.random.uniform(kk, shape, jnp.float32, -bound, bound)

    return {
        "w_ih_f": u(keys[0], (4 * hidden, input_size), kl),
        "w_hh_f": u(keys[1], (4 * hidden, hidden), kl),
        "b_ih_f": u(keys[2], (4 * hidden,), kl),
        "b_hh_f": u(keys[3], (4 * hidden,), kl),
        "w_ih_b": u(keys[4], (4 * hidden, input_size), kl),
        "w_hh_b": u(keys[5], (4 * hidden, hidden), kl),
        "b_ih_b": u(keys[6], (4 * hidden,), kl),
        "b_hh_b": u(keys[7], (4 * hidden,), kl),
        "w1": u(keys[8], (sh2, sh2), kf),   # linearlayer1.weight
        "b1": u(keys[9], (sh2,), kf),       # linearlayer1.bias
        "w2": u(keys[10], (1, sh2), kf),    # linearlayer2.weight (no bias)
    }


if __name__ == "__main__":
    # D = 2*hidden = 128 (lane-dense), T = 8 (full sublane tile), B even.
    B, T, input_size, hidden = 16, 8, 32, 64
    key = jax.random.PRNGKey(0)
    kx, kp, kl = jax.random.split(key, 3)
    params = init_params(kp, input_size, hidden)
    x = jax.random.normal(kx, (B, T, input_size), jnp.float32)
    sen_len = jax.random.randint(kl, (B,), 1, T + 1, dtype=jnp.int32)

    out = jax.jit(attention_forward)(params, x, sen_len)
    out = jax.block_until_ready(out)
    assert out.shape == (B // 2, 4 * hidden), out.shape
    assert bool(jnp.all(jnp.isfinite(out)))
    print("KERNEL_OK")
</pallas_src>

<mosaic_0001>
module attributes {stable_mosaic.version = 11 : i64} {
  func.func @_matmul_bias_kernel(%arg0: i32, %arg1: i32, %arg2: memref<128x32xbf16, #tpu.memory_space<vmem>>, %arg3: memref<32x512xbf16, #tpu.memory_space<vmem>>, %arg4: memref<1x512xf32, #tpu.memory_space<vmem>>, %arg5: memref<128x512xf32, #tpu.memory_space<vmem>>) attributes {dimension_semantics = [#tpu.dimension_semantics<parallel>, #tpu.dimension_semantics<parallel>], iteration_bounds = array<i64: 1, 1>, scalar_prefetch = 0 : i64, scratch_operands = 0 : i64, tpu.core_type = #tpu.core_type<tc>, window_params = [{transform_indices = @transform_0, window_bounds = array<i64: 128, 32>}, {transform_indices = @transform_1, window_bounds = array<i64: 32, 512>}, {transform_indices = @transform_2, window_bounds = array<i64: 1, 512>}, {transform_indices = @transform_3, window_bounds = array<i64: 128, 512>}]} {
    %c0 = arith.constant 0 : index
    %c0_0 = arith.constant 0 : index
    %0 = vector.load %arg2[%c0, %c0_0] : memref<128x32xbf16, #tpu.memory_space<vmem>>, vector<128x32xbf16>
    %c0_1 = arith.constant 0 : index
    %c0_2 = arith.constant 0 : index
    %1 = vector.load %arg3[%c0_1, %c0_2] : memref<32x512xbf16, #tpu.memory_space<vmem>>, vector<32x512xbf16>
    %cst = arith.constant dense<0.000000e+00> : vector<128x512xf32>
    %2 = tpu.matmul %0, %1, %cst {dimension_numbers = #tpu.dot_dimension_numbers<[1], [0], [0], [1], [0, 0, 1, 1], [], []>} : vector<128x32xbf16>, vector<32x512xbf16>, vector<128x512xf32> -> vector<128x512xf32>
    %c0_3 = arith.constant 0 : index
    %c0_4 = arith.constant 0 : index
    %3 = vector.load %arg4[%c0_3, %c0_4] : memref<1x512xf32, #tpu.memory_space<vmem>>, vector<1x512xf32>
    %4 = vector.broadcast %3 : vector<1x512xf32> to vector<128x512xf32>
    %5 = arith.addf %2, %4 : vector<128x512xf32>
    %c0_5 = arith.constant 0 : index
    %c0_6 = arith.constant 0 : index
    %6 = vector.load %arg5[%c0_5, %c0_6] : memref<128x512xf32, #tpu.memory_space<vmem>>, vector<128x512xf32>
    tpu.vector_store %arg5[%c0_5, %c0_6], %5 {strides = array<i32>} : memref<128x512xf32, #tpu.memory_space<vmem>>, vector<128x512xf32>,
    return
  }
  func.func @transform_0(%arg0: i32, %arg1: i32) -> (i32, i32) {
    %c0_i32 = arith.constant 0 : i32
    %c0_i32_0 = arith.constant 0 : i32
    return %arg0, %c0_i32 : i32, i32
  }
  func.func @transform_1(%arg0: i32, %arg1: i32) -> (i32, i32) {
    %c0_i32 = arith.constant 0 : i32
    %c0_i32_0 = arith.constant 0 : i32
    return %c0_i32, %arg1 : i32, i32
  }
  func.func @transform_2(%arg0: i32, %arg1: i32) -> (i32, i32) {
    %c0_i32 = arith.constant 0 : i32
    %c0_i32_0 = arith.constant 0 : i32
    return %c0_i32, %arg1 : i32, i32
  }
  func.func @transform_3(%arg0: i32, %arg1: i32) -> (i32, i32) {
    %c0_i32 = arith.constant 0 : i32
    return %arg0, %arg1 : i32, i32
  }
}

module attributes {stable_mosaic.version = 11 : i64} {
  func.func @_attention_kernel(%arg0: i32, %arg1: memref<8x8x128xf32, #tpu.memory_space<vmem>>, %arg2: memref<8x1xi32, #tpu.memory_space<vmem>>, %arg3: memref<128x128xbf16, #tpu.memory_space<vmem>>, %arg4: memref<1x128xf32, #tpu.memory_space<vmem>>, %arg5: memref<1x128xf32, #tpu.memory_space<vmem>>, %arg6: memref<8x128xf32, #tpu.memory_space<vmem>>) attributes {dimension_semantics = [#tpu.dimension_semantics<parallel>], iteration_bounds = array<i64: 2>, scalar_prefetch = 0 : i64, scratch_operands = 0 : i64, tpu.core_type = #tpu.core_type<tc>, window_params = [{transform_indices = @transform_0, window_bounds = array<i64: 8, 8, 128>}, {transform_indices = @transform_1, window_bounds = array<i64: 8, 1>}, {pipeline_mode = #tpu.pipeline_mode<synchronous>, transform_indices = @transform_2, window_bounds = array<i64: 128, 128>}, {pipeline_mode = #tpu.pipeline_mode<synchronous>, transform_indices = @transform_3, window_bounds = array<i64: 1, 128>}, {pipeline_mode = #tpu.pipeline_mode<synchronous>, transform_indices = @transform_4, window_bounds = array<i64: 1, 128>}, {transform_indices = @transform_5, window_bounds = array<i64: 8, 128>}]} {
    %c0 = arith.constant 0 : index
    %c0_0 = arith.constant 0 : index
    %c0_1 = arith.constant 0 : index
    %0 = vector.load %arg1[%c0, %c0_0, %c0_1] : memref<8x8x128xf32, #tpu.memory_space<vmem>>, vector<8x8x128xf32>
    %1 = vector.shape_cast %0 : vector<8x8x128xf32> to vector<64x128xf32>
    %2 = arith.truncf %1 : vector<64x128xf32> to vector<64x128xbf16>
    %c0_2 = arith.constant 0 : index
    %c0_3 = arith.constant 0 : index
    %3 = vector.load %arg3[%c0_2, %c0_3] : memref<128x128xbf16, #tpu.memory_space<vmem>>, vector<128x128xbf16>
    %cst = arith.constant dense<0.000000e+00> : vector<64x128xf32>
    %4 = tpu.matmul %2, %3, %cst {dimension_numbers = #tpu.dot_dimension_numbers<[1], [0], [0], [1], [0, 0, 1, 1], [], []>} : vector<64x128xbf16>, vector<128x128xbf16>, vector<64x128xf32> -> vector<64x128xf32>
    %c0_4 = arith.constant 0 : index
    %c0_5 = arith.constant 0 : index
    %5 = vector.load %arg4[%c0_4, %c0_5] : memref<1x128xf32, #tpu.memory_space<vmem>>, vector<1x128xf32>
    %6 = vector.broadcast %5 : vector<1x128xf32> to vector<64x128xf32>
    %7 = arith.addf %4, %6 : vector<64x128xf32>
    %8 = math.tanh %7 : vector<64x128xf32>
    %9 = vector.shape_cast %8 : vector<64x128xf32> to vector<8x8x128xf32>
    %c0_6 = arith.constant 0 : index
    %c0_7 = arith.constant 0 : index
    %10 = vector.load %arg5[%c0_6, %c0_7] : memref<1x128xf32, #tpu.memory_space<vmem>>, vector<1x128xf32>
    %11 = vector.shape_cast %10 : vector<1x128xf32> to vector<1x1x128xf32>
    %12 = vector.broadcast %11 : vector<1x1x128xf32> to vector<8x8x128xf32>
    %13 = arith.mulf %9, %12 : vector<8x8x128xf32>
    %cst_8 = arith.constant dense<0.000000e+00> : vector<8x8xf32>
    %14 = vector.multi_reduction <add>, %13, %cst_8 [2] : vector<8x8x128xf32> to vector<8x8xf32>
    %15 = tpu.iota {dimensions = array<i32: 1>} : vector<8x8xi32>
    %c0_9 = arith.constant 0 : index
    %c0_10 = arith.constant 0 : index
    %16 = vector.load %arg2[%c0_9, %c0_10] : memref<8x1xi32, #tpu.memory_space<vmem>>, vector<8x1xi32>
    %17 = vector.broadcast %16 : vector<8x1xi32> to vector<8x8xi32>
    %18 = arith.cmpi slt, %15, %17 : vector<8x8xi32>
    %cst_11 = arith.constant -1.000000e+30 : f32
    %19 = vector.broadcast %cst_11 : f32 to vector<8x8xf32>
    %20 = arith.select %18, %14, %19 : vector<8x8xi1>, vector<8x8xf32>
    %cst_12 = arith.constant dense<0xFF800000> : vector<8xf32>
    %21 = vector.multi_reduction <maximumf>, %20, %cst_12 [1] : vector<8x8xf32> to vector<8xf32>
    %22 = vector.shape_cast %21 : vector<8xf32> to vector<8x1xf32>
    %23 = vector.broadcast %22 : vector<8x1xf32> to vector<8x8xf32>
    %24 = arith.subf %20, %23 : vector<8x8xf32>
    %25 = math.exp %24 : vector<8x8xf32>
    %26 = arith.extui %18 : vector<8x8xi1> to vector<8x8xi32>
    %27 = arith.sitofp %26 : vector<8x8xi32> to vector<8x8xf32>
    %28 = arith.mulf %25, %27 : vector<8x8xf32>
    %cst_13 = arith.constant dense<0.000000e+00> : vector<8xf32>
    %29 = vector.multi_reduction <add>, %28, %cst_13 [1] : vector<8x8xf32> to vector<8xf32>
    %30 = vector.shape_cast %29 : vector<8xf32> to vector<8x1xf32>
    %cst_14 = arith.constant 9.99999971E-10 : f32
    %31 = vector.broadcast %cst_14 : f32 to vector<8x1xf32>
    %32 = arith.addf %30, %31 : vector<8x1xf32>
    %33 = tpu.reciprocal %32 {approx = true} : vector<8x1xf32> -> vector<8x1xf32>
    %34 = vector.broadcast %33 : vector<8x1xf32> to vector<8x8xf32>
    %35 = arith.mulf %28, %34 : vector<8x8xf32>
    %36 = vector.shape_cast %35 : vector<8x8xf32> to vector<8x1x8xf32>
    "tpu.trace_start"() <{level = 10 : i32, message = "bqt,btd->bqd"}> : () -> ()
    %cst_15 = arith.constant dense<0.000000e+00> : vector<8x1x128xf32>
    %37 = tpu.matmul %36, %0, %cst_15 {dimension_numbers = #tpu.dot_dimension_numbers<[2], [1], [1], [2], [0, 0, 0, 1, 1, 2], [0], [0]>} : vector<8x1x8xf32>, vector<8x8x128xf32>, vector<8x1x128xf32> -> vector<8x1x128xf32>
    "tpu.trace_stop"() : () -> ()
    %38 = vector.shape_cast %37 : vector<8x1x128xf32> to vector<8x128xf32>
    %c0_16 = arith.constant 0 : index
    %c0_17 = arith.constant 0 : index
    %39 = vector.load %arg6[%c0_16, %c0_17] : memref<8x128xf32, #tpu.memory_space<vmem>>, vector<8x128xf32>
    tpu.vector_store %arg6[%c0_16, %c0_17], %38 {strides = array<i32>} : memref<8x128xf32, #tpu.memory_space<vmem>>, vector<8x128xf32>,
    return
  }
  func.func @transform_0(%arg0: i32) -> (i32, i32, i32) {
    %c0_i32 = arith.constant 0 : i32
    %c0_i32_0 = arith.constant 0 : i32
    %c0_i32_1 = arith.constant 0 : i32
    return %arg0, %c0_i32, %c0_i32_0 : i32, i32, i32
  }
  func.func @transform_1(%arg0: i32) -> (i32, i32) {
    %c0_i32 = arith.constant 0 : i32
    %c0_i32_0 = arith.constant 0 : i32
    return %arg0, %c0_i32 : i32, i32
  }
  func.func @transform_2(%arg0: i32) -> (i32, i32) {
    %c0_i32 = arith.constant 0 : i32
    %c0_i32_0 = arith.constant 0 : i32
    %c0_i32_1 = arith.constant 0 : i32
    return %c0_i32, %c0_i32_0 : i32, i32
  }
  func.func @transform_3(%arg0: i32) -> (i32, i32) {
    %c0_i32 = arith.constant 0 : i32
    %c0_i32_0 = arith.constant 0 : i32
    %c0_i32_1 = arith.constant 0 : i32
    return %c0_i32, %c0_i32_0 : i32, i32
  }
  func.func @transform_4(%arg0: i32) -> (i32, i32) {
    %c0_i32 = arith.constant 0 : i32
    %c0_i32_0 = arith.constant 0 : i32
    %c0_i32_1 = arith.constant 0 : i32
    return %c0_i32, %c0_i32_0 : i32, i32
  }
  func.func @transform_5(%arg0: i32) -> (i32, i32) {
    %c0_i32 = arith.constant 0 : i32
    %c0_i32_0 = arith.constant 0 : i32
    return %arg0, %c0_i32 : i32, i32
  }
}

</mosaic_0001>

<bundles_post_ra>
// kernel: custom-call.2
= control target key start
LH: loop header
LB: loop body
LE: loop exit
PB: predicated region body
PF: predicated region fallthrough
CT: control target
= control target key end

     0   :  { %s6_s0 = inlined_call_operand.vmem [shape: f32[8,16,2,64], index: 0, kind: output, shape index: {}]  }

// kernel: custom-call
= control target key start
LH: loop header
LB: loop body
LE: loop exit
PB: predicated region body
PF: predicated region fallthrough
CT: control target
= control target key end

     0   :  { %s6_s0 = inlined_call_operand.vmem [shape: f32[16,2,64], index: 0, kind: output, shape index: {}]  }

// kernel: attention_forward.2
= control target key start
LH: loop header
LB: loop body
LE: loop exit
PB: predicated region body
PF: predicated region fallthrough
CT: control target
= control target key end

     0   :  { %v513_v1 = vmov 0   ;;  %vm141_vm0 = vcmask 261120   ;;  %v41_v17 = vlaneseq  ;;  %s865_s1 = inlined_call_operand.vmem [shape: bf16[32,512], index: 1, kind: input, shape index: {}]   ;;  %s866_s0 = inlined_call_operand.vmem [shape: bf16[128,32], index: 0, kind: input, shape index: {}]   ;;  %s867_s2 = inlined_call_operand.vmem [shape: f32[1,512], index: 2, kind: input, shape index: {}]   ;;  %s868_s3 = inlined_call_operand.vmem [shape: f32[128,512], index: 3, kind: output, shape index: {}]  }
   0x1   :  { %v493_v0 = vld [vmem:[%s865_s1 + $0x24] ss:$16 sps:$4 sm:$0xff]   ;;  %198 = vmatprep.mubr.bf16.mxu0 %v513_v1  ;;  %311 = vmatprep.mubr.bf16.mxu1 %v513_v1  ;;  %v495_v2 = vld [vmem:[%s865_s1 + $0x2c] ss:$16 sps:$4 sm:$0xff]   ;;  %v497_v3 = vld [vmem:[%s865_s1 + $0x20] ss:$16 sps:$4 sm:$0xff]  }
   0x2   :  { %178 = vmatprep.subr.bf16.mxu0 %v493_v0  ;;  %v498_v4 = vld [vmem:[%s865_s1 + $0x28] ss:$16 sps:$4 sm:$0xff]   ;;  %291 = vmatprep.subr.bf16.mxu1 %v495_v2  ;;  %v499_v5 = vld [vmem:[%s865_s1 + $0x4] ss:$16 sps:$4 sm:$0xff]   ;;  %v501_v6 = vld [vmem:[%s865_s1 + $0xc] ss:$16 sps:$4 sm:$0xff]  }
   0x3   :  { %179 = vmatpush1.bf16.msra.mxu0 %v497_v3  ;;  %292 = vmatpush1.bf16.msra.mxu1 %v498_v4  ;;  %v503_v7 = vld [vmem:[%s865_s1] ss:$16 sps:$4 sm:$0xff]   ;;  %v504_v8 = vld [vmem:[%s865_s1 + $0x8] ss:$16 sps:$4 sm:$0xff]   ;;  %v42_v18 = vshrl.u32 %v41_v17, 7 }
   0x4   :  { %180 = vmatprep.subr.bf16.mxu0 %v499_v5  ;;  %293 = vmatprep.subr.bf16.mxu1 %v501_v6  ;;  %v505_v9 = vld [vmem:[%s866_s0] sm:$0xff]   ;;  %v506_v10 = vld [vmem:[%s866_s0 + $0x8] sm:$0xff]   ;;  %v507_v11 = vld [vmem:[%s866_s0 + $0x10] sm:$0xff]  }
   0x5   :  { %v508_v12 = vld [vmem:[%s866_s0 + $0x18] sm:$0xff]   ;;  %v509_v13 = vld [vmem:[%s866_s0 + $0x20] sm:$0xff]   ;;  %v510_v14 = vld [vmem:[%s866_s0 + $0x28] sm:$0xff]   ;;  %v43_v19 = vsub.s32 0, %v42_v18  ;;  %v51_v20 = vsub.s32 2, %v42_v18  ;;  %v47_v22 = vsub.s32 1, %v42_v18 }
   0x6   :  { %v511_v15 = vld [vmem:[%s866_s0 + $0x30] sm:$0xff]   ;;  %v512_v16 = vld [vmem:[%s866_s0 + $0x38] sm:$0xff]   ;;  %v39_v21 = vld [vmem:[%s867_s2] sm:$0xf]  ;;  %v55_v23 = vsub.s32 3, %v42_v18 }
   0x7   :  { %181 = vmatpush1.bf16.msra.mxu0 %v503_v7  ;;  %294 = vmatpush1.bf16.msra.mxu1 %v504_v8  ;;  %v601_v24 = vrot.slane %v39_v21, %v43_v19  ;;  %v603_v25 = vrot.slane %v39_v21, %v51_v20  ;;  %v605_v26 = vrot.slane %v39_v21, %v47_v22 }
   0x8   :  { %v607_v27 = vrot.slane %v39_v21, %v55_v23 }
   0xa   :  { %476 = vmatmul.mubr.msk.bf16.vlgmr.msra.gmra.mxu0 %vm141_vm0, %v505_v9  ;;  %484 = vmatmul.mubr.msk.bf16.vlgmr.msra.gmra.mxu1 %vm141_vm0, %v505_v9 }
   0xb   :  { %208 = vmatprep.mubr.bf16.mxu0 %v513_v1  ;;  %321 = vmatprep.mubr.bf16.mxu1 %v513_v1 }
  0x12   :  { %477 = vmatmul.mubr.msk.bf16.gmra.mxu0 %vm141_vm0, %v506_v10  ;;  %485 = vmatmul.mubr.msk.bf16.gmra.mxu1 %vm141_vm0, %v506_v10 }
  0x13   :  { %218 = vmatprep.mubr.bf16.mxu0 %v513_v1  ;;  %331 = vmatprep.mubr.bf16.mxu1 %v513_v1 }
  0x1a   :  { %478 = vmatmul.mubr.msk.bf16.gmra.mxu0 %vm141_vm0, %v507_v11  ;;  %486 = vmatmul.mubr.msk.bf16.gmra.mxu1 %vm141_vm0, %v507_v11 }
  0x1b   :  { %228 = vmatprep.mubr.bf16.mxu0 %v513_v1  ;;  %341 = vmatprep.mubr.bf16.mxu1 %v513_v1 }
  0x22   :  { %479 = vmatmul.mubr.msk.bf16.gmra.mxu0 %vm141_vm0, %v508_v12  ;;  %487 = vmatmul.mubr.msk.bf16.gmra.mxu1 %vm141_vm0, %v508_v12 }
  0x23   :  { %238 = vmatprep.mubr.bf16.mxu0 %v513_v1  ;;  %351 = vmatprep.mubr.bf16.mxu1 %v513_v1 }
  0x2a   :  { %480 = vmatmul.mubr.msk.bf16.gmra.mxu0 %vm141_vm0, %v509_v13  ;;  %488 = vmatmul.mubr.msk.bf16.gmra.mxu1 %vm141_vm0, %v509_v13 }
  0x2b   :  { %248 = vmatprep.mubr.bf16.mxu0 %v513_v1  ;;  %361 = vmatprep.mubr.bf16.mxu1 %v513_v1 }
  0x32   :  { %481 = vmatmul.mubr.msk.bf16.gmra.mxu0 %vm141_vm0, %v510_v14  ;;  %489 = vmatmul.mubr.msk.bf16.gmra.mxu1 %vm141_vm0, %v510_v14 }
  0x33   :  { %258 = vmatprep.mubr.bf16.mxu0 %v513_v1  ;;  %371 = vmatprep.mubr.bf16.mxu1 %v513_v1 }
  0x3a   :  { %482 = vmatmul.mubr.msk.bf16.gmra.mxu0 %vm141_vm0, %v511_v15  ;;  %490 = vmatmul.mubr.msk.bf16.gmra.mxu1 %vm141_vm0, %v511_v15 }
  0x3b   :  { %268 = vmatprep.mubr.bf16.mxu0 %v513_v1  ;;  %381 = vmatprep.mubr.bf16.mxu1 %v513_v1 }
  0x42   :  { %483 = vmatmul.mubr.msk.bf16.gmra.mxu0 %vm141_vm0, %v512_v16  ;;  %491 = vmatmul.mubr.msk.bf16.gmra.mxu1 %vm141_vm0, %v512_v16 }
  0xca   :  { %v200_v28 = vpop.f32.mrf.mxu0  ;;  %v313_v29 = vpop.f32.mrf.mxu1 }
  0xcb   :  { %v201_v30 = vadd.f32 %v200_v28, %v601_v24  ;;  %v314_v31 = vadd.f32 %v313_v29, %v603_v25 }
  0xcc   :  { %v202_v32 = vpop.f32.mrf.mxu0  ;;  %v315_v33 = vpop.f32.mrf.mxu1 }
  0xcd   :  { %392 = vst [vmem:[%s868_s3] sm:$0xff] %v201_v30  ;;  %394 = vst [vmem:[%s868_s3 + $0x10] sm:$0xff] %v314_v31  ;;  %v203_v34 = vadd.f32 %v202_v32, %v605_v26  ;;  %v316_v35 = vadd.f32 %v315_v33, %v607_v27 }
  0xce   :  { %v204_v36 = vpop.f32.mrf.mxu0  ;;  %v317_v37 = vpop.f32.mrf.mxu1 }
  0xcf   :  { %393 = vst [vmem:[%s868_s3 + $0x8] sm:$0xff] %v203_v34  ;;  %395 = vst [vmem:[%s868_s3 + $0x18] sm:$0xff] %v316_v35  ;;  %v205_v38 = vadd.f32 %v204_v36, %v601_v24  ;;  %v318_v39 = vadd.f32 %v317_v37, %v603_v25 }
  0xd0   :  { %v206_v40 = vpop.f32.mrf.mxu0  ;;  %v319_v41 = vpop.f32.mrf.mxu1 }
  0xd1   :  { %396 = vst [vmem:[%s868_s3 + $0x20] sm:$0xff] %v205_v38  ;;  %398 = vst [vmem:[%s868_s3 + $0x30] sm:$0xff] %v318_v39  ;;  %v207_v42 = vadd.f32 %v206_v40, %v605_v26  ;;  %v320_v43 = vadd.f32 %v319_v41, %v607_v27 }
  0xd2   :  { %v210_v44 = vpop.f32.mrf.mxu0  ;;  %v323_v45 = vpop.f32.mrf.mxu1 }
  0xd3   :  { %397 = vst [vmem:[%s868_s3 + $0x28] sm:$0xff] %v207_v42  ;;  %399 = vst [vmem:[%s868_s3 + $0x38] sm:$0xff] %v320_v43  ;;  %v211_v46 = vadd.f32 %v210_v44, %v601_v24  ;;  %v324_v47 = vadd.f32 %v323_v45, %v603_v25 }
  0xd4   :  { %v212_v48 = vpop.f32.mrf.mxu0  ;;  %v325_v49 = vpop.f32.mrf.mxu1 }
  0xd5   :  { %400 = vst [vmem:[%s868_s3 + $0x40] sm:$0xff] %v211_v46  ;;  %402 = vst [vmem:[%s868_s3 + $0x50] sm:$0xff] %v324_v47  ;;  %v213_v50 = vadd.f32 %v212_v48, %v605_v26  ;;  %v326_v51 = vadd.f32 %v325_v49, %v607_v27 }
  0xd6   :  { %v214_v52 = vpop.f32.mrf.mxu0  ;;  %v327_v53 = vpop.f32.mrf.mxu1 }
  0xd7   :  { %401 = vst [vmem:[%s868_s3 + $0x48] sm:$0xff] %v213_v50  ;;  %403 = vst [vmem:[%s868_s3 + $0x58] sm:$0xff] %v326_v51  ;;  %v215_v54 = vadd.f32 %v214_v52, %v601_v24  ;;  %v328_v55 = vadd.f32 %v327_v53, %v603_v25 }
  0xd8   :  { %v216_v56 = vpop.f32.mrf.mxu0  ;;  %v329_v57 = vpop.f32.mrf.mxu1 }
  0xd9   :  { %404 = vst [vmem:[%s868_s3 + $0x60] sm:$0xff] %v215_v54  ;;  %406 = vst [vmem:[%s868_s3 + $0x70] sm:$0xff] %v328_v55  ;;  %v217_v58 = vadd.f32 %v216_v56, %v605_v26  ;;  %v330_v59 = vadd.f32 %v329_v57, %v607_v27 }
  0xda   :  { %v220_v60 = vpop.f32.mrf.mxu0  ;;  %v333_v61 = vpop.f32.mrf.mxu1 }
  0xdb   :  { %405 = vst [vmem:[%s868_s3 + $0x68] sm:$0xff] %v217_v58  ;;  %407 = vst [vmem:[%s868_s3 + $0x78] sm:$0xff] %v330_v59  ;;  %v221_v62 = vadd.f32 %v220_v60, %v601_v24  ;;  %v334_v63 = vadd.f32 %v333_v61, %v603_v25 }
  0xdc   :  { %v222_v0 = vpop.f32.mrf.mxu0  ;;  %v335_v1 = vpop.f32.mrf.mxu1 }
  0xdd   :  { %408 = vst [vmem:[%s868_s3 + $0x80] sm:$0xff] %v221_v62  ;;  %410 = vst [vmem:[%s868_s3 + $0x90] sm:$0xff] %v334_v63  ;;  %v223_v2 = vadd.f32 %v222_v0, %v605_v26  ;;  %v336_v3 = vadd.f32 %v335_v1, %v607_v27 }
  0xde   :  { %v224_v4 = vpop.f32.mrf.mxu0  ;;  %v337_v5 = vpop.f32.mrf.mxu1 }
  0xdf   :  { %409 = vst [vmem:[%s868_s3 + $0x88] sm:$0xff] %v223_v2  ;;  %411 = vst [vmem:[%s868_s3 + $0x98] sm:$0xff] %v336_v3  ;;  %v225_v6 = vadd.f32 %v224_v4, %v601_v24  ;;  %v338_v7 = vadd.f32 %v337_v5, %v603_v25 }
  0xe0   :  { %v226_v8 = vpop.f32.mrf.mxu0  ;;  %v339_v9 = vpop.f32.mrf.mxu1 }
  0xe1   :  { %412 = vst [vmem:[%s868_s3 + $0xa0] sm:$0xff] %v225_v6  ;;  %414 = vst [vmem:[%s868_s3 + $0xb0] sm:$0xff] %v338_v7  ;;  %v227_v10 = vadd.f32 %v226_v8, %v605_v26  ;;  %v340_v11 = vadd.f32 %v339_v9, %v607_v27 }
  0xe2   :  { %v230_v12 = vpop.f32.mrf.mxu0  ;;  %v343_v13 = vpop.f32.mrf.mxu1 }
  0xe3   :  { %413 = vst [vmem:[%s868_s3 + $0xa8] sm:$0xff] %v227_v10  ;;  %415 = vst [vmem:[%s868_s3 + $0xb8] sm:$0xff] %v340_v11  ;;  %v231_v14 = vadd.f32 %v230_v12, %v601_v24  ;;  %v344_v15 = vadd.f32 %v343_v13, %v603_v25 }
  0xe4   :  { %v232_v16 = vpop.f32.mrf.mxu0  ;;  %v345_v17 = vpop.f32.mrf.mxu1 }
  0xe5   :  { %416 = vst [vmem:[%s868_s3 + $0xc0] sm:$0xff] %v231_v14  ;;  %418 = vst [vmem:[%s868_s3 + $0xd0] sm:$0xff] %v344_v15  ;;  %v233_v18 = vadd.f32 %v232_v16, %v605_v26  ;;  %v346_v19 = vadd.f32 %v345_v17, %v607_v27 }
  0xe6   :  { %v234_v20 = vpop.f32.mrf.mxu0  ;;  %v347_v21 = vpop.f32.mrf.mxu1 }
  0xe7   :  { %417 = vst [vmem:[%s868_s3 + $0xc8] sm:$0xff] %v233_v18  ;;  %419 = vst [vmem:[%s868_s3 + $0xd8] sm:$0xff] %v346_v19  ;;  %v235_v22 = vadd.f32 %v234_v20, %v601_v24  ;;  %v348_v23 = vadd.f32 %v347_v21, %v603_v25 }
  0xe8   :  { %v236_v28 = vpop.f32.mrf.mxu0  ;;  %v349_v29 = vpop.f32.mrf.mxu1 }
  0xe9   :  { %420 = vst [vmem:[%s868_s3 + $0xe0] sm:$0xff] %v235_v22  ;;  %422 = vst [vmem:[%s868_s3 + $0xf0] sm:$0xff] %v348_v23  ;;  %v237_v30 = vadd.f32 %v236_v28, %v605_v26  ;;  %v350_v31 = vadd.f32 %v349_v29, %v607_v27 }
  0xea   :  { %v240_v32 = vpop.f32.mrf.mxu0  ;;  %v353_v33 = vpop.f32.mrf.mxu1 }
  0xeb   :  { %421 = vst [vmem:[%s868_s3 + $0xe8] sm:$0xff] %v237_v30  ;;  %423 = vst [vmem:[%s868_s3 + $0xf8] sm:$0xff] %v350_v31  ;;  %v241_v34 = vadd.f32 %v240_v32, %v601_v24  ;;  %v354_v35 = vadd.f32 %v353_v33, %v603_v25 }
  0xec   :  { %v242_v36 = vpop.f32.mrf.mxu0  ;;  %v355_v37 = vpop.f32.mrf.mxu1 }
  0xed   :  { %424 = vst [vmem:[%s868_s3 + $0x100] sm:$0xff] %v241_v34  ;;  %426 = vst [vmem:[%s868_s3 + $0x110] sm:$0xff] %v354_v35  ;;  %v243_v38 = vadd.f32 %v242_v36, %v605_v26  ;;  %v356_v39 = vadd.f32 %v355_v37, %v607_v27 }
  0xee   :  { %v244_v40 = vpop.f32.mrf.mxu0  ;;  %v357_v41 = vpop.f32.mrf.mxu1 }
  0xef   :  { %425 = vst [vmem:[%s868_s3 + $0x108] sm:$0xff] %v243_v38  ;;  %427 = vst [vmem:[%s868_s3 + $0x118] sm:$0xff] %v356_v39  ;;  %v245_v42 = vadd.f32 %v244_v40, %v601_v24  ;;  %v358_v43 = vadd.f32 %v357_v41, %v603_v25 }
  0xf0   :  { %v246_v44 = vpop.f32.mrf.mxu0  ;;  %v359_v45 = vpop.f32.mrf.mxu1 }
  0xf1   :  { %428 = vst [vmem:[%s868_s3 + $0x120] sm:$0xff] %v245_v42  ;;  %430 = vst [vmem:[%s868_s3 + $0x130] sm:$0xff] %v358_v43  ;;  %v247_v46 = vadd.f32 %v246_v44, %v605_v26  ;;  %v360_v47 = vadd.f32 %v359_v45, %v607_v27 }
  0xf2   :  { %v250_v48 = vpop.f32.mrf.mxu0  ;;  %v363_v49 = vpop.f32.mrf.mxu1 }
  0xf3   :  { %429 = vst [vmem:[%s868_s3 + $0x128] sm:$0xff] %v247_v46  ;;  %431 = vst [vmem:[%s868_s3 + $0x138] sm:$0xff] %v360_v47  ;;  %v251_v50 = vadd.f32 %v250_v48, %v601_v24  ;;  %v364_v51 = vadd.f32 %v363_v49, %v603_v25 }
  0xf4   :  { %v252_v52 = vpop.f32.mrf.mxu0  ;;  %v365_v53 = vpop.f32.mrf.mxu1 }
  0xf5   :  { %432 = vst [vmem:[%s868_s3 + $0x140] sm:$0xff] %v251_v50  ;;  %434 = vst [vmem:[%s868_s3 + $0x150] sm:$0xff] %v364_v51  ;;  %v253_v54 = vadd.f32 %v252_v52, %v605_v26  ;;  %v366_v55 = vadd.f32 %v365_v53, %v607_v27 }
  0xf6   :  { %v254_v56 = vpop.f32.mrf.mxu0  ;;  %v367_v57 = vpop.f32.mrf.mxu1 }
  0xf7   :  { %433 = vst [vmem:[%s868_s3 + $0x148] sm:$0xff] %v253_v54  ;;  %435 = vst [vmem:[%s868_s3 + $0x158] sm:$0xff] %v366_v55  ;;  %v255_v58 = vadd.f32 %v254_v56, %v601_v24  ;;  %v368_v59 = vadd.f32 %v367_v57, %v603_v25 }
  0xf8   :  { %v256_v60 = vpop.f32.mrf.mxu0  ;;  %v369_v61 = vpop.f32.mrf.mxu1 }
  0xf9   :  { %436 = vst [vmem:[%s868_s3 + $0x160] sm:$0xff] %v255_v58  ;;  %438 = vst [vmem:[%s868_s3 + $0x170] sm:$0xff] %v368_v59  ;;  %v257_v62 = vadd.f32 %v256_v60, %v605_v26  ;;  %v370_v63 = vadd.f32 %v369_v61, %v607_v27 }
  0xfa   :  { %v260_v0 = vpop.f32.mrf.mxu0  ;;  %v373_v1 = vpop.f32.mrf.mxu1 }
  0xfb   :  { %437 = vst [vmem:[%s868_s3 + $0x168] sm:$0xff] %v257_v62  ;;  %439 = vst [vmem:[%s868_s3 + $0x178] sm:$0xff] %v370_v63  ;;  %v261_v2 = vadd.f32 %v260_v0, %v601_v24  ;;  %v374_v3 = vadd.f32 %v373_v1, %v603_v25 }
  0xfc   :  { %v262_v4 = vpop.f32.mrf.mxu0  ;;  %v375_v5 = vpop.f32.mrf.mxu1 }
  0xfd   :  { %440 = vst [vmem:[%s868_s3 + $0x180] sm:$0xff] %v261_v2  ;;  %442 = vst [vmem:[%s868_s3 + $0x190] sm:$0xff] %v374_v3  ;;  %v263_v6 = vadd.f32 %v262_v4, %v605_v26  ;;  %v376_v7 = vadd.f32 %v375_v5, %v607_v27 }
  0xfe   :  { %v264_v8 = vpop.f32.mrf.mxu0  ;;  %v377_v9 = vpop.f32.mrf.mxu1 }
  0xff   :  { %441 = vst [vmem:[%s868_s3 + $0x188] sm:$0xff] %v263_v6  ;;  %443 = vst [vmem:[%s868_s3 + $0x198] sm:$0xff] %v376_v7  ;;  %v265_v10 = vadd.f32 %v264_v8, %v601_v24  ;;  %v378_v11 = vadd.f32 %v377_v9, %v603_v25 }
 0x100   :  { %v266_v12 = vpop.f32.mrf.mxu0  ;;  %v379_v13 = vpop.f32.mrf.mxu1 }
 0x101   :  { %444 = vst [vmem:[%s868_s3 + $0x1a0] sm:$0xff] %v265_v10  ;;  %446 = vst [vmem:[%s868_s3 + $0x1b0] sm:$0xff] %v378_v11  ;;  %v267_v14 = vadd.f32 %v266_v12, %v605_v26  ;;  %v380_v15 = vadd.f32 %v379_v13, %v607_v27 }
 0x102   :  { %v270_v16 = vpop.f32.mrf.mxu0  ;;  %v383_v17 = vpop.f32.mrf.mxu1 }
 0x103   :  { %445 = vst [vmem:[%s868_s3 + $0x1a8] sm:$0xff] %v267_v14  ;;  %447 = vst [vmem:[%s868_s3 + $0x1b8] sm:$0xff] %v380_v15  ;;  %v271_v18 = vadd.f32 %v270_v16, %v601_v24  ;;  %v384_v19 = vadd.f32 %v383_v17, %v603_v25 }
 0x104   :  { %v272_v20 = vpop.f32.mrf.mxu0  ;;  %v385_v21 = vpop.f32.mrf.mxu1 }
 0x105   :  { %448 = vst [vmem:[%s868_s3 + $0x1c0] sm:$0xff] %v271_v18  ;;  %450 = vst [vmem:[%s868_s3 + $0x1d0] sm:$0xff] %v384_v19  ;;  %v273_v22 = vadd.f32 %v272_v20, %v605_v26  ;;  %v386_v23 = vadd.f32 %v385_v21, %v607_v27 }
 0x106   :  { %v274_v28 = vpop.f32.mrf.mxu0  ;;  %v387_v29 = vpop.f32.mrf.mxu1 }
 0x107   :  { %449 = vst [vmem:[%s868_s3 + $0x1c8] sm:$0xff] %v273_v22  ;;  %451 = vst [vmem:[%s868_s3 + $0x1d8] sm:$0xff] %v386_v23  ;;  %v275_v30 = vadd.f32 %v274_v28, %v601_v24  ;;  %v388_v31 = vadd.f32 %v387_v29, %v603_v25 }
 0x108   :  { %v276_v32 = vpop.f32.mrf.mxu0  ;;  %v389_v33 = vpop.f32.mrf.mxu1 }
 0x109   :  { %452 = vst [vmem:[%s868_s3 + $0x1e0] sm:$0xff] %v275_v30  ;;  %454 = vst [vmem:[%s868_s3 + $0x1f0] sm:$0xff] %v388_v31  ;;  %v277_v34 = vadd.f32 %v276_v32, %v605_v26  ;;  %v390_v35 = vadd.f32 %v389_v33, %v607_v27 }
 0x10b   :  { %453 = vst [vmem:[%s868_s3 + $0x1e8] sm:$0xff] %v277_v34  ;;  %455 = vst [vmem:[%s868_s3 + $0x1f8] sm:$0xff] %v390_v35 }

// kernel: attention_forward.3
= control target key start
LH: loop header
LB: loop body
LE: loop exit
PB: predicated region body
PF: predicated region fallthrough
CT: control target
= control target key end

     0   :  { %s1429_s18 = smov 0   ;;  %s1582_s0 = inlined_call_operand.vmem [shape: f32[16,8,128], index: 0, kind: input, shape index: {}]   ;;  %s1583_s1 = inlined_call_operand.vmem [shape: s32[16,1], index: 1, kind: input, shape index: {}]   ;;  %s1584_s2 = inlined_call_operand.vmem [shape: bf16[128,128], index: 2, kind: input, shape index: {}]   ;;  %s1585_s3 = inlined_call_operand.vmem [shape: f32[1,128], index: 3, kind: input, shape index: {}]   ;;  %s1586_s4 = inlined_call_operand.vmem [shape: f32[1,128], index: 4, kind: input, shape index: {}]   ;;  %s1587_s5 = inlined_call_operand.vmem [shape: f32[16,128], index: 5, kind: output, shape index: {}]  }
   0x1 LB: > { %s1435_s19 = sadd.s32 4294967295, %s1393_s18   ;;  %p1228_p0 = scmp.ge.s32.totalorder %s1393_s18, 1  ;;  %s1393_s18 = sphi %s1429_s18, %s15_s18  }
   0x2   : > { %p197_p1 = scmp.lt.s32.totalorder %s1393_s18, 3 }
   0x4   : > { %p198_p2 = pnand %p1228_p0, %p197_p1 }
   0x5   : > { %s1229_s22 = sshll.u32 (!%p198_p2), %s1435_s19, 3  ;;  %p234_p4 = scmp.lt.s32.totalorder (!%p198_p2), %s1435_s19, 1 }
   0x6   : > { %201 = sbr.rel (%p198_p2) target bundleno = 962 (0x3c2), region = 40  ;;  %p229_p3 = scmp.lt.s32.totalorder (!%p198_p2), %s1229_s22, 15 }
   0xb   : > { %v1359_v0 = vld [vmem:[%s1584_s2 + $0x38] sm:$0xff]   ;;  %v1360_v1 = vld [vmem:[%s1584_s2 + $0x30] sm:$0xff]   ;;  %s1589_s22 = smov (!%p229_p3, %s1229_s22), 15  ;;  %v1361_v2 = vld [vmem:[%s1584_s2 + $0x28] sm:$0xff]   ;;  %v1395_v20 = vmov 0   ;;  %s1591_s19 = smov (!%p234_p4, %s1435_s19), 1  ;;  %v430_v57 = vlaneseq }
   0xc   : > { %1282 = vmatprep.subr.bf16.mxu0 %v1359_v0  ;;  %s1230_s27 = sshll.u32 %s1589_s22, 3  ;;  %v1362_v3 = vld [vmem:[%s1584_s2 + $0x20] sm:$0xff]   ;;  %v1363_v7 = vld [vmem:[%s1584_s2 + $0x18] sm:$0xff]   ;;  %v1364_v8 = vld [vmem:[%s1584_s2 + $0x10] sm:$0xff]   ;;  %1358 = vset.pattern.permute.xlu0 %v1395_v20  ;;  %s1231_s22 = sshll.u32 %s1591_s19, 3  ;;  %v1396_v55 = vmov 0.0  }
   0xd   : > { %1283 = vmatpush3.bf16.msra.mxu0 %v1359_v0  ;;  %s1452_s30 = scalar_lea.vmem %s1582_s0, %s1230_s27  ;;  %v1365_v9 = vld [vmem:[%s1584_s2 + $0x8] sm:$0xff]   ;;  %v1366_v10 = vld [vmem:[%s1584_s2] sm:$0xff]   ;;  %1306 = vmatprep.subr.mxu1 %v1396_v55  ;;  %s237_s25 = scalar_lea.vmem %s1583_s1, %s1231_s22  ;;  %v431_v58 = vand.u32 127, %v430_v57  ;;  %v446_v59 = vshrl.u32 %v430_v57, 7  ;;  %vm477_vm0 = vcmask 1041409   ;;  %vm479_vm1 = vcmask 1042434  }
   0xe   : > { %1284 = vmatprep.subr.bf16.mxu0 %v1360_v1  ;;  %v1458_v4 = vld [vmem:[%s1452_s30] sm:$0xff]  ;;  %v1461_v5 = vld [vmem:[%s1452_s30 + $0x8] sm:$0xff]  ;;  %v1478_v11 = vld [vmem:[%s1452_s30 + $0x10] sm:$0xff]  ;;  %vm481_vm2 = vcmask 1043459   ;;  %vm483_vm3 = vcmask 1044484   ;;  %vm485_vm4 = vcmask 1045509   ;;  %s241_s28 = scalar_lea.vmem %s1587_s5, %s1231_s22 }
   0xf   : > { %v251_v6 = vpack.c.bf16 %v1461_v5, %v1458_v4  ;;  %v1481_v12 = vld [vmem:[%s1452_s30 + $0x18] sm:$0xff]  ;;  %v1484_v13 = vld [vmem:[%s1452_s30 + $0x20] sm:$0xff]  ;;  %v1487_v14 = vld [vmem:[%s1452_s30 + $0x28] sm:$0xff]  ;;  %1307 = vmatpush3.msra.mxu1 %v1458_v4  ;;  %v447_v62 = vsub.s32 %v431_v58, %v446_v59  ;;  %vm487_vm5 = vcmask 1046534   ;;  %vm489_vm6 = vcmask 1047559  }
  0x10   : > { %v252_v15 = vpack.c.bf16 %v1481_v12, %v1478_v11  ;;  %v253_v16 = vpack.c.bf16 %v1487_v14, %v1484_v13  ;;  %v1494_v17 = vld [vmem:[%s1452_s30 + $0x30] sm:$0xff]  ;;  %v1497_v18 = vld [vmem:[%s1452_s30 + $0x38] sm:$0xff]  ;;  %v1233_v21 = vld [vmem:[%s1585_s3] ss:$0 sm:$0xff]  ;;  %1311 = vmatprep.subr.mxu1 %v1396_v55  ;;  %vm493_vm7 = vcmask 64512   ;;  %vm1397_vm9 = vmmov 0  }
  0x11   : > { %1285 = vmatpush3.bf16.msra.mxu0 %v1360_v1  ;;  %1298 = vmatprep.mubr.bf16.mxu0 %v251_v6  ;;  %v254_v19 = vpack.c.bf16 %v1497_v18, %v1494_v17  ;;  %v1242_v36 = vld [vmem:[%s1586_s4] ss:$0 sm:$0xff] }
  0x12   : > { %1286 = vmatprep.subr.bf16.mxu0 %v1361_v2  ;;  %v432_v56 = vld [vmem:[%s237_s25] sm:$0xff]  ;;  %1308 = vmatprep.mubr.msk.f32.mxu1 %vm1397_vm9, %v1396_v55 }
  0x15   : > { %1287 = vmatpush3.bf16.msra.mxu0 %v1361_v2 }
  0x16   : > { %1288 = vmatprep.subr.bf16.mxu0 %v1362_v3 }
  0x19   : > { %1289 = vmatpush3.bf16.msra.mxu0 %v1362_v3 }
  0x1a   : > { %1290 = vmatprep.subr.bf16.mxu0 %v1363_v7 }
  0x1d   : > { %1291 = vmatpush3.bf16.msra.mxu0 %v1363_v7 }
  0x1e   : > { %1292 = vmatprep.subr.bf16.mxu0 %v1364_v8 }
  0x21   : > { %1293 = vmatpush3.bf16.msra.mxu0 %v1364_v8 }
  0x22   : > { %1294 = vmatprep.subr.bf16.mxu0 %v1365_v9 }
  0x25   : > { %1295 = vmatpush3.bf16.msra.mxu0 %v1365_v9 }
  0x26   : > { %1296 = vmatprep.subr.bf16.mxu0 %v1366_v10 }
  0x29   : > { %1297 = vmatpush3.bf16.msra.mxu0 %v1366_v10 }
  0x2c   : > { %1299 = vmatmul.mubr.bf16.vlgmr.msra.gmra.mxu0 %v252_v15 }
  0x2d   : > { %1302 = vmatprep.mubr.bf16.mxu0 %v253_v16 }
  0x34   : > { %1303 = vmatmul.mubr.bf16.gmra.mxu0 %v254_v19 }
  0xec   : > { %v1300_v22 = vpop.f32.mrf.mxu0 }
  0xed   : > { %v369_v23 = vadd.f32 %v1300_v22, %v1233_v21 }
  0xee   : > { %v360_v24 = vpop.f32.mrf.mxu0 }
  0xef   : > { %1367 = vtanh.f32 %v369_v23  ;;  %v361_v25 = vadd.f32 %v1233_v21, %v360_v24 }
  0xf0   : > { %v1301_v26 = vpop.f32.mrf.mxu0 }
  0xf1   : > { %1369 = vtanh.f32 %v361_v25  ;;  %v372_v27 = vadd.f32 %v1301_v26, %v1233_v21 }
  0xf2   : > { %v363_v28 = vpop.f32.mrf.mxu0 }
  0xf3   : > { %1371 = vtanh.f32 %v372_v27  ;;  %v364_v29 = vadd.f32 %v1233_v21, %v363_v28 }
  0xf4   : > { %v1304_v30 = vpop.f32.mrf.mxu0 }
  0xf5   : > { %1373 = vtanh.f32 %v364_v29  ;;  %v385_v31 = vadd.f32 %v1304_v30, %v1233_v21 }
  0xf6   : > { %v376_v32 = vpop.f32.mrf.mxu0 }
  0xf7   : > { %1375 = vtanh.f32 %v385_v31  ;;  %v377_v33 = vadd.f32 %v1233_v21, %v376_v32 }
  0xf8   : > { %v1305_v34 = vpop.f32.mrf.mxu0 }
  0xf9   : > { %1377 = vtanh.f32 %v377_v33  ;;  %v388_v37 = vadd.f32 %v1305_v34, %v1233_v21 }
  0xfa   : > { %v379_v35 = vpop.f32.mrf.mxu0 }
  0xfb   : > { %v380_v38 = vadd.f32 %v1233_v21, %v379_v35 }
  0xfc   : > { %v1368_v39 = vpop.eup %1367 }
  0xfd   : > { %1379 = vtanh.f32 %v380_v38  ;;  %v408_v40 = vmul.f32 %v1368_v39, %v1242_v36  ;;  %v1398_v39 = vmov 1966171168  }
  0xfe   : > { %v1370_v41 = vpop.eup %1369  ;;  %1381 = vtanh.f32 %v388_v37 }
  0xff   : > { %418 = vadd.xlane.f32.xlu1 %v408_v40  ;;  %v406_v42 = vmul.f32 %v1370_v41, %v1242_v36  ;;  %v512_v40 = vunpack.c.l.s4 %v1398_v39 }
 0x100   : > { %v1372_v43 = vpop.eup %1371 }
 0x101   : > { %414 = vadd.xlane.f32.xlu0 %v406_v42  ;;  %v409_v44 = vmul.f32 %v1372_v43, %v1242_v36  ;;  %v513_v41 = vunpack.c.0.s8 %v512_v40 }
 0x102   : > { %v1374_v45 = vpop.eup %1373 }
 0x103   : > { %420 = vadd.xlane.f32.xlu1 %v409_v44  ;;  %v407_v46 = vmul.f32 %v1374_v45, %v1242_v36  ;;  %v516_v42 = vsub.s32 %v513_v41, %v446_v59 }
 0x104   : > { %v1376_v47 = vpop.eup %1375 }
 0x105   : > { %416 = vadd.xlane.f32.xlu0 %v407_v46  ;;  %v412_v48 = vmul.f32 %v1376_v47, %v1242_v36 }
 0x106   : > { %v1378_v49 = vpop.eup %1377 }
 0x107   : > { %v410_v52 = vmul.f32 %v1378_v49, %v1242_v36 }
 0x109   : > { %426 = vadd.xlane.f32.xlu0 %v412_v48 }
 0x10a   : > { %v1380_v50 = vpop.eup %1379 }
 0x10b   : > { %v411_v51 = vmul.f32 %v1380_v50, %v1242_v36  ;;  %v1382_v53 = vpop.eup %1381 }
 0x10c   : > { %v413_v54 = vmul.f32 %v1382_v53, %v1242_v36 }
 0x10d   : > { %424 = vadd.xlane.f32.xlu1 %v411_v51  ;;  %422 = vadd.xlane.f32.xlu0 %v410_v52 }
 0x111   : > { %428 = vadd.xlane.f32.xlu1 %v413_v54 }
 0x123   : > { %434 = vperm.xlu0 %1358, %v432_v56  }
 0x188   : > { %v419_v61 = vpop.xlane.xlu1 %418 }
 0x189   : > { %v456_v4 = vrot.slane %v419_v61, %v447_v62 }
 0x18a   : > { %v415_v60 = vpop.xlane.xlu0 %414 }
 0x18b   : > { %v448_v1 = vrot.slane %v415_v60, %v447_v62 }
 0x18c   : > { %v421_v2 = vpop.xlane.xlu1 %420 }
 0x18d   : > { %v460_v8 = vrot.slane %v421_v2, %v447_v62 }
 0x18e   : > { %v417_v63 = vpop.xlane.xlu0 %416 }
 0x18f   : > { %v452_v0 = vrot.slane %v417_v63, %v447_v62 }
 0x191   : > { %v478_v3 = vsel %vm477_vm0, %v452_v0, %v448_v1 }
 0x192   : > { %v427_v6 = vpop.xlane.xlu0 %426  ;;  %v480_v7 = vsel %vm479_vm1, %v456_v4, %v478_v3 }
 0x193   : > { %v482_v19 = vsel %vm481_vm2, %v460_v8, %v480_v7  ;;  %v472_v21 = vrot.slane %v427_v6, %v447_v62 }
 0x196   : > { %v425_v9 = vpop.xlane.xlu1 %424  ;;  %v423_v10 = vpop.xlane.xlu0 %422 }
 0x197   : > { %v468_v15 = vrot.slane %v425_v9, %v447_v62  ;;  %v464_v16 = vrot.slane %v423_v10, %v447_v62 }
 0x199   : > { %v484_v20 = vsel %vm483_vm3, %v464_v16, %v482_v19 }
 0x19a   : > { %v429_v22 = vpop.xlane.xlu1 %428  ;;  %v486_v23 = vsel %vm485_vm4, %v468_v15, %v484_v20 }
 0x19b   : > { %v476_v24 = vrot.slane %v429_v22, %v447_v62  ;;  %v488_v25 = vsel %vm487_vm5, %v472_v21, %v486_v23 }
 0x19d   : > { %v490_v27 = vsel %vm489_vm6, %v476_v24, %v488_v25 }
 0x19e   : > { %v435_v26 = vpop.permute.xlu0 %434 }
 0x19f   : > { %vm436_vm8 = vcmp.lt.s32.totalorder %v431_v58, %v435_v26 }
 0x1a0   : > { %v492_v28 = vsel %vm436_vm8, %v490_v27, -1e+30  ;;  %v1243_v34 = vsel %vm436_vm8, 1.0, %v1396_v55 }
 0x1a1   : > { %v494_v29 = vsel %vm493_vm7, %v492_v28, -inf }
 0x1a2   : > { %495 = vmax.xlane.f32.xlu1 %v494_v29 }
 0x22b   : > { %v496_v30 = vpop.xlane.xlu1 %495 }
 0x22c   : > { %v497_v31 = vsub.f32 %v492_v28, %v496_v30 }
 0x22e   : > { %v498_v32 = vmul.f32 1.442695, %v497_v31 }
 0x230   : > { %1383 = vpow2.f32 %v498_v32 }
 0x23d   : > { %v1384_v33 = vpop.eup %1383 }
 0x23e   : > { %v502_v35 = vmul.f32 %v1384_v33, %v1243_v34 }
 0x240   : > { %v503_v36 = vsel %vm493_vm7, %v502_v35, 0.0 }
 0x241   : > { %504 = vadd.xlane.f32.xlu1 %v503_v36 }
 0x2ca   : > { %v505_v37 = vpop.xlane.xlu1 %504 }
 0x2cb   : > { %v506_v38 = vadd.f32 1e-09, %v505_v37 }
 0x2cd   : > { %1385 = vrcp.f32 %v506_v38 }
 0x2da   : > { %v1386_v43 = vpop.eup %1385 }
 0x2db   : > { %v508_v44 = vmul.f32 %v1386_v43, %v502_v35 }
 0x2dd   : > { %v517_v45 = vrot.slane %v508_v44, %v516_v42  ;;  %v510_v49 = vcombine.high %v508_v44, %v508_v44 }
 0x2df   : > { %v525_v46 = vcombine.high %v517_v45, %v517_v45  ;;  %v533_v47 = vrot.slane %v517_v45, %v516_v42  ;;  %v524_v51 = vrot.slane %v510_v49, %v516_v42 }
 0x2e1   : > { %1309 = vmatmul.mubr.msk.f32.vlgmr.msra.gmra.mxu1 %vm493_vm7, %v533_v47  ;;  %v547_v48 = vrot.slane %v525_v46, %v516_v42  ;;  %v555_v50 = vcombine.high %v533_v47, %v533_v47  ;;  %v526_v52 = vcombine.high %v524_v51, %v524_v51 }
 0x2e2   : > { %1312 = vmatpush3.msra.mxu1 %v1461_v5  ;;  %1313 = vmatprep.mubr.msk.f32.mxu1 %vm1397_vm9, %v1396_v55 }
 0x2e3   : > { %1316 = vmatprep.subr.mxu1 %v1396_v55  ;;  %v557_v5 = vcombine.high %v547_v48, %v547_v48 }
 0x2e5   : > { %1314 = vmatmul.mubr.msk.f32.vlgmr.msra.gmra.mxu1 %vm493_vm7, %v547_v48 }
 0x2e6   : > { %1317 = vmatpush3.msra.mxu1 %v1478_v11  ;;  %1318 = vmatprep.mubr.msk.f32.mxu1 %vm1397_vm9, %v1396_v55  ;;  %v540_v11 = vrot.slane %v524_v51, %v516_v42 }
 0x2e7   : > { %1321 = vmatprep.subr.mxu1 %v1396_v55 }
 0x2e9   : > { %1319 = vmatmul.mubr.msk.f32.vlgmr.msra.gmra.mxu1 %vm493_vm7, %v555_v50 }
 0x2ea   : > { %1322 = vmatpush3.msra.mxu1 %v1481_v12  ;;  %1323 = vmatprep.mubr.msk.f32.mxu1 %vm1397_vm9, %v1396_v55  ;;  %v554_v12 = vrot.slane %v526_v52, %v516_v42 }
 0x2eb   : > { %1326 = vmatprep.subr.mxu1 %v1396_v55 }
 0x2ed   : > { %1324 = vmatmul.mubr.msk.f32.vlgmr.msra.gmra.mxu1 %vm493_vm7, %v557_v5 }
 0x2ee   : > { %1327 = vmatpush3.msra.mxu1 %v1484_v13  ;;  %1328 = vmatprep.mubr.msk.f32.mxu1 %vm1397_vm9, %v1396_v55  ;;  %v556_v13 = vcombine.high %v540_v11, %v540_v11 }
 0x2ef   : > { %1331 = vmatprep.subr.mxu1 %v1396_v55 }
 0x2f1   : > { %1329 = vmatmul.mubr.msk.f32.vlgmr.msra.gmra.mxu1 %vm493_vm7, %v540_v11 }
 0x2f2   : > { %1332 = vmatpush3.msra.mxu1 %v1487_v14  ;;  %1333 = vmatprep.mubr.msk.f32.mxu1 %vm1397_vm9, %v1396_v55  ;;  %v558_v14 = vcombine.high %v554_v12, %v554_v12 }
 0x2f3   : > { %1336 = vmatprep.subr.mxu1 %v1396_v55 }
 0x2f5   : > { %1334 = vmatmul.mubr.msk.f32.vlgmr.msra.gmra.mxu1 %vm493_vm7, %v554_v12 }
 0x2f6   : > { %1337 = vmatpush3.msra.mxu1 %v1494_v17  ;;  %1338 = vmatprep.mubr.msk.f32.mxu1 %vm1397_vm9, %v1396_v55 }
 0x2f7   : > { %1341 = vmatprep.subr.mxu1 %v1396_v55 }
 0x2f9   : > { %1339 = vmatmul.mubr.msk.f32.vlgmr.msra.gmra.mxu1 %vm493_vm7, %v556_v13 }
 0x2fa   : > { %1342 = vmatpush3.msra.mxu1 %v1497_v18  ;;  %1343 = vmatprep.mubr.msk.f32.mxu1 %vm1397_vm9, %v1396_v55 }
 0x2fd   : > { %1344 = vmatmul.mubr.msk.f32.vlgmr.msra.gmra.mxu1 %vm493_vm7, %v558_v14 }
 0x3a1   : > { %v627_v53 = vpop.f32.mrf.mxu1 }
 0x3a3   : > { %v1310_v54 = vpop.f32.mrf.mxu1 }
 0x3a5   : > { %v699_v56 = vpop.f32.mrf.mxu1 }
 0x3a6   : > { %v1143_v0 = vrot.slane %v699_v56, 7 }
 0x3a7   : > { %v1315_v17 = vpop.f32.mrf.mxu1 }
 0x3a8   : > { %v1144_v6 = vsel %vm477_vm0, %v1143_v0, %v627_v53 }
 0x3a9   : > { %v771_v57 = vpop.f32.mrf.mxu1 }
 0x3aa   : > { %v1145_v18 = vrot.slane %v771_v57, 6 }
 0x3ab   : > { %v1320_v58 = vpop.f32.mrf.mxu1 }
 0x3ac   : > { %v1146_v7 = vsel %vm479_vm1, %v1145_v18, %v1144_v6 }
 0x3ad   : > { %v843_v59 = vpop.f32.mrf.mxu1 }
 0x3ae   : > { %v1147_v2 = vrot.slane %v843_v59, 5 }
 0x3af   : > { %v1325_v60 = vpop.f32.mrf.mxu1 }
 0x3b0   : > { %v1148_v10 = vsel %vm481_vm2, %v1147_v2, %v1146_v7 }
 0x3b1   : > { %v915_v61 = vpop.f32.mrf.mxu1 }
 0x3b2   : > { %v1149_v55 = vrot.slane %v915_v61, 4 }
 0x3b3   : > { %v1330_v62 = vpop.f32.mrf.mxu1 }
 0x3b4   : > { %v1150_v15 = vsel %vm483_vm3, %v1149_v55, %v1148_v10 }
 0x3b5   : > { %v987_v63 = vpop.f32.mrf.mxu1 }
 0x3b6   : > { %v1151_v4 = vrot.slane %v987_v63, 3 }
 0x3b7   : > { %v1335_v1 = vpop.f32.mrf.mxu1 }
 0x3b8   : > { %v1152_v19 = vsel %vm485_vm4, %v1151_v4, %v1150_v15 }
 0x3b9   : > { %v1059_v3 = vpop.f32.mrf.mxu1 }
 0x3ba   : > { %v1153_v8 = vrot.slane %v1059_v3, 2 }
 0x3bb   : > { %v1340_v9 = vpop.f32.mrf.mxu1 }
 0x3bc   : > { %v1154_v21 = vsel %vm487_vm5, %v1153_v8, %v1152_v19 }
 0x3bd   : > { %v1131_v16 = vpop.f32.mrf.mxu1 }
 0x3be   : > { %v1155_v20 = vrot.slane %v1131_v16, 1 }
 0x3bf   : > { %v1345_v22 = vpop.f32.mrf.mxu1 }
 0x3c0   : > { %v1156_v23 = vsel %vm489_vm6, %v1155_v20, %v1154_v21 }
 0x3c1   : > { %1158 = vst [vmem:[%s241_s28] sm:$0xff] %v1156_v23 }
 0x3c2 PF: > { %s15_s18 = sadd.s32 1, %s1393_s18  }
 0x3c3   : > { %p12_p5 = scmp.ge.s32.totalorder %s15_s18, 4  }
 0x3c5   :  { %14 = sbr.rel (!%p12_p5) target bundleno = 1 (0x1), region = 73 }

</bundles_post_ra>
